<compile_context>
chip_gen: v7x
topology: tpu7x:2x2x1
jax: 0.10.0
libtpu: 0.0.40
codegen_flags: <defaults>
</compile_context>

<pallas_src>
import jax
import jax.numpy as jnp
from jax import lax
from jax.experimental import pallas as pl
from jax.experimental.pallas import tpu as pltpu

POOLED = 4        # MDNBottleneckHeadForSMP._pooled_image_size
HIDDEN1 = 2048    # first Linear width
HIDDEN2 = 512     # second Linear width
TILE_H = 512      # tile of the HIDDEN1 reduction axis (2048 % TILE_H == 0)


def mdn_head_kernel(x_ref, w1_ref, b1_ref, w2_ref, b2_ref, wh_ref, bh_ref,
                    out_ref, acc_ref):
    """One reduction step over a TILE_H slice of the first hidden layer.

    x_ref:   (B, feat)       bf16  (resident across the grid)
    w1_ref:  (feat, TILE_H)  bf16  (streamed)
    b1_ref:  (1, TILE_H)     f32   (streamed)
    w2_ref:  (TILE_H, 512)   bf16  (streamed)
    b2_ref:  (1, 512)        f32   (resident)
    wh_ref:  (512, 3K)       bf16  fused [pi | mean | sigma] weights (resident)
    bh_ref:  (1, 3K)         f32   fused biases (resident)
    out_ref: (B, 3K)         f32   -> [softmax(pi) | mean | exp(sigma)]
    acc_ref: (B, 512)        f32   scratch accumulator (2nd Linear output)
    """
    k = pl.program_id(0)

    @pl.when(k == 0)
    def _init():
        acc_ref[...] = jnp.zeros_like(acc_ref)

    # Layer 1 tile (bf16 MXU, f32 accumulate) + bias, then its contribution to
    # the 2048-dim reduction of layer 2.
    h1 = jnp.dot(x_ref[...], w1_ref[...],
                 preferred_element_type=jnp.float32) + b1_ref[...]
    acc_ref[...] += jnp.dot(h1.astype(w2_ref.dtype), w2_ref[...],
                            preferred_element_type=jnp.float32)

    @pl.when(k == pl.num_programs(0) - 1)
    def _finalize():
        k3 = out_ref.shape[1]
        num_k = k3 // 3

        h2 = acc_ref[...] + b2_ref[...]
        heads = jnp.dot(h2.astype(wh_ref.dtype), wh_ref[...],
                        preferred_element_type=jnp.float32) + bh_ref[...]

        # Lane-wise activations on the fused (B, 3K) tile: no concat, one store.
        lane = lax.broadcasted_iota(jnp.int32, heads.shape, 1)
        is_pi = lane < num_k
        is_sigma = lane >= 2 * num_k

        # softmax over the pi lanes only (all math in f32 for v5e VPU/EUP).
        pi_masked = jnp.where(is_pi, heads, -jnp.inf)
        pi_max = jnp.max(pi_masked, axis=1, keepdims=True)
        pi_exp = jnp.where(is_pi, jnp.exp(heads - pi_max), 0.0)
        inv_den = pl.reciprocal(jnp.sum(pi_exp, axis=1, keepdims=True),
                                approx=True)

        out_ref[...] = jnp.where(
            is_pi, pi_exp * inv_den,
            jnp.where(is_sigma, jnp.exp(heads), heads))


def prepare_params(params):
    """Fuse the three head projections into one (512, 3K) matmul and cast the
    large weight matrices to bf16 (accumulation stays f32 in-kernel)."""
    wh = jnp.concatenate([params["wp"], params["wm"], params["ws"]], axis=1)
    bh = jnp.concatenate([params["bp"], params["bm"], params["bs"]], axis=1)
    return dict(
        w1=params["w1"].astype(jnp.bfloat16),
        b1=params["b1"].astype(jnp.float32),
        w2=params["w2"].astype(jnp.bfloat16),
        b2=params["b2"].astype(jnp.float32),
        wh=wh.astype(jnp.bfloat16),
        bh=bh.astype(jnp.float32),
    )


def mdn_bottleneck_head_forward(x, params):
    """Pallas implementation of MDNBottleneckHeadForSMP.forward (eval mode)."""
    B, C, H, W = x.shape
    assert H % POOLED == 0 and W % POOLED == 0, "use H, W divisible by 4"

    # AdaptiveAvgPool2d(4): exact block mean when H, W divide evenly; Flatten.
    xp = x.reshape(B, C, POOLED, H // POOLED, POOLED, W // POOLED).mean(axis=(3, 5))
    x_flat = xp.reshape(B, C * POOLED * POOLED).astype(jnp.bfloat16)
    # TODO(synk): nn.Dropout(p=0.5) is treated as eval-mode identity (no RNG mask).

    p = params if "wh" in params else prepare_params(params)
    feat = x_flat.shape[1]
    k3 = p["wh"].shape[1]
    num_h_tiles = HIDDEN1 // TILE_H

    flops = 2 * B * (feat * HIDDEN1 + HIDDEN1 * HIDDEN2 + HIDDEN2 * k3)
    bytes_accessed = (x_flat.size * 2
                      + (p["w1"].size + p["w2"].size + p["wh"].size) * 2
                      + (p["b1"].size + p["b2"].size + p["bh"].size) * 4
                      + B * k3 * 4)

    out = pl.pallas_call(
        mdn_head_kernel,
        out_shape=jax.ShapeDtypeStruct((B, k3), jnp.float32),
        grid_spec=pltpu.PrefetchScalarGridSpec(
            num_scalar_prefetch=0,
            grid=(num_h_tiles,),
            in_specs=[
                pl.BlockSpec((B, feat), lambda k: (0, 0)),          # x (resident)
                pl.BlockSpec((feat, TILE_H), lambda k: (0, k)),     # w1 (streamed)
                pl.BlockSpec((1, TILE_H), lambda k: (0, k)),        # b1 (streamed)
                pl.BlockSpec((TILE_H, HIDDEN2), lambda k: (k, 0)),  # w2 (streamed)
                pl.BlockSpec((1, HIDDEN2), lambda k: (0, 0)),       # b2 (resident)
                pl.BlockSpec((HIDDEN2, k3), lambda k: (0, 0)),      # wh (resident)
                pl.BlockSpec((1, k3), lambda k: (0, 0)),            # bh (resident)
            ],
            out_specs=pl.BlockSpec((B, k3), lambda k: (0, 0)),
            scratch_shapes=[pltpu.VMEM((B, HIDDEN2), jnp.float32)],
        ),
        compiler_params=pltpu.CompilerParams(
            dimension_semantics=("arbitrary",)),  # reduction axis
        cost_estimate=pl.CostEstimate(
            flops=flops,
            transcendentals=6 * B * k3,
            bytes_accessed=bytes_accessed),
    )(x_flat, p["w1"], p["b1"], p["w2"], p["b2"], p["wh"], p["bh"])

    return out[..., None]  # .unsqueeze(dim=-1) -> (B, 3K, 1)


def _linear_init(key, fan_in, fan_out):
    """Deterministic PyTorch-style uniform(-1/sqrt(fan_in), 1/sqrt(fan_in))."""
    kw, kb = jax.random.split(key)
    bound = 1.0 / jnp.sqrt(jnp.float32(fan_in))
    w = jax.random.uniform(kw, (fan_in, fan_out), jnp.float32, -bound, bound)
    b = jax.random.uniform(kb, (1, fan_out), jnp.float32, -bound, bound)
    return w, b


def init_params(key, in_channels, mixture_components):
    feat = in_channels * POOLED * POOLED
    k1, k2, kp, km, ks = jax.random.split(key, 5)
    w1, b1 = _linear_init(k1, feat, HIDDEN1)
    w2, b2 = _linear_init(k2, HIDDEN1, HIDDEN2)
    wp, bp = _linear_init(kp, HIDDEN2, mixture_components)
    wm, bm = _linear_init(km, HIDDEN2, mixture_components)
    ws, bs = _linear_init(ks, HIDDEN2, mixture_components)
    return dict(w1=w1, b1=b1, w2=w2, b2=b2,
                wp=wp, bp=bp, wm=wm, bm=bm, ws=ws, bs=bs)


def reference_forward(x, params):
    """Pure-JAX reference (eval mode) using the same bf16 weight quantization,
    so the check isolates kernel correctness from the (intentional) quant."""
    p = prepare_params(params)
    B, C, H, W = x.shape
    xp = x.reshape(B, C, POOLED, H // POOLED, POOLED, W // POOLED).mean(axis=(3, 5))
    h = xp.reshape(B, C * POOLED * POOLED).astype(jnp.bfloat16)
    h1 = jnp.dot(h, p["w1"], preferred_element_type=jnp.float32) + p["b1"]
    h2 = jnp.dot(h1.astype(jnp.bfloat16), p["w2"],
                 preferred_element_type=jnp.float32) + p["b2"]
    heads = jnp.dot(h2.astype(jnp.bfloat16), p["wh"],
                    preferred_element_type=jnp.float32) + p["bh"]
    num_k = heads.shape[1] // 3
    pi = jax.nn.softmax(heads[:, :num_k], axis=1)
    mean = heads[:, num_k:2 * num_k]
    sigma = jnp.exp(heads[:, 2 * num_k:])
    return jnp.concatenate([pi, mean, sigma], axis=1)[..., None]


if __name__ == "__main__":
    B, C, H, W = 2, 4, 16, 16
    K = 3  # mixture_components

    key = jax.random.PRNGKey(0)
    kx, kp = jax.random.split(key)
    x = jax.random.normal(kx, (B, C, H, W), dtype=jnp.float32)
    params = init_params(kp, in_channels=C, mixture_components=K)

    fwd = jax.jit(mdn_bottleneck_head_forward)
    out = jax.block_until_ready(fwd(x, params))

    ref = reference_forward(x, params)
    assert out.shape == (B, 3 * K, 1), out.shape
    # bf16 weights + approx reciprocal -> loosened tolerance vs the f32 ref.
    assert jnp.allclose(out, ref, atol=1e-2, rtol=1e-2), "mismatch vs reference"

    print("KERNEL_OK")
</pallas_src>

<mosaic_0001>
module attributes {stable_mosaic.version = 11 : i64} {
  func.func @mdn_head_kernel(%arg0: i32, %arg1: memref<2x64xbf16, #tpu.memory_space<vmem>>, %arg2: memref<64x512xbf16, #tpu.memory_space<vmem>>, %arg3: memref<1x512xf32, #tpu.memory_space<vmem>>, %arg4: memref<512x512xbf16, #tpu.memory_space<vmem>>, %arg5: memref<1x512xf32, #tpu.memory_space<vmem>>, %arg6: memref<512x9xbf16, #tpu.memory_space<vmem>>, %arg7: memref<1x9xf32, #tpu.memory_space<vmem>>, %arg8: memref<2x9xf32, #tpu.memory_space<vmem>>, %arg9: memref<2x512xf32, #tpu.memory_space<vmem>>) attributes {dimension_semantics = [#tpu.dimension_semantics<arbitrary>], iteration_bounds = array<i64: 4>, scalar_prefetch = 0 : i64, scratch_operands = 1 : i64, tpu.core_type = #tpu.core_type<tc>, window_params = [{pipeline_mode = #tpu.pipeline_mode<synchronous>, transform_indices = @transform_0, window_bounds = array<i64: 2, 64>}, {transform_indices = @transform_1, window_bounds = array<i64: 64, 512>}, {transform_indices = @transform_2, window_bounds = array<i64: 1, 512>}, {transform_indices = @transform_3, window_bounds = array<i64: 512, 512>}, {pipeline_mode = #tpu.pipeline_mode<synchronous>, transform_indices = @transform_4, window_bounds = array<i64: 1, 512>}, {pipeline_mode = #tpu.pipeline_mode<synchronous>, transform_indices = @transform_5, window_bounds = array<i64: 512, 9>}, {pipeline_mode = #tpu.pipeline_mode<synchronous>, transform_indices = @transform_6, window_bounds = array<i64: 1, 9>}, {pipeline_mode = #tpu.pipeline_mode<synchronous>, transform_indices = @transform_7, window_bounds = array<i64: 2, 9>}]} {
    %c0_i32 = arith.constant 0 : i32
    %0 = arith.cmpi eq, %arg0, %c0_i32 : i32
    %1 = arith.extui %0 : i1 to i32
    %c0_i32_0 = arith.constant 0 : i32
    %2 = arith.cmpi ne, %1, %c0_i32_0 : i32
    scf.if %2 {
      %cst_14 = arith.constant 0.000000e+00 : f32
      %18 = vector.broadcast %cst_14 : f32 to vector<2x512xf32>
      %c0_15 = arith.constant 0 : index
      %c0_16 = arith.constant 0 : index
      %19 = vector.load %arg9[%c0_15, %c0_16] : memref<2x512xf32, #tpu.memory_space<vmem>>, vector<2x512xf32>
      tpu.vector_store %arg9[%c0_15, %c0_16], %18 {strides = array<i32>} : memref<2x512xf32, #tpu.memory_space<vmem>>, vector<2x512xf32>,
    } else {
    }
    %c0 = arith.constant 0 : index
    %c0_1 = arith.constant 0 : index
    %3 = vector.load %arg1[%c0, %c0_1] : memref<2x64xbf16, #tpu.memory_space<vmem>>, vector<2x64xbf16>
    %c0_2 = arith.constant 0 : index
    %c0_3 = arith.constant 0 : index
    %4 = vector.load %arg2[%c0_2, %c0_3] : memref<64x512xbf16, #tpu.memory_space<vmem>>, vector<64x512xbf16>
    %cst = arith.constant dense<0.000000e+00> : vector<2x512xf32>
    %5 = tpu.matmul %3, %4, %cst {dimension_numbers = #tpu.dot_dimension_numbers<[1], [0], [0], [1], [0, 0, 1, 1], [], []>} : vector<2x64xbf16>, vector<64x512xbf16>, vector<2x512xf32> -> vector<2x512xf32>
    %c0_4 = arith.constant 0 : index
    %c0_5 = arith.constant 0 : index
    %6 = vector.load %arg3[%c0_4, %c0_5] : memref<1x512xf32, #tpu.memory_space<vmem>>, vector<1x512xf32>
    %7 = vector.broadcast %6 : vector<1x512xf32> to vector<2x512xf32>
    %8 = arith.addf %5, %7 : vector<2x512xf32>
    %c0_6 = arith.constant 0 : index
    %c0_7 = arith.constant 0 : index
    %9 = vector.load %arg9[%c0_6, %c0_7] : memref<2x512xf32, #tpu.memory_space<vmem>>, vector<2x512xf32>
    %10 = arith.truncf %8 : vector<2x512xf32> to vector<2x512xbf16>
    %c0_8 = arith.constant 0 : index
    %c0_9 = arith.constant 0 : index
    %11 = vector.load %arg4[%c0_8, %c0_9] : memref<512x512xbf16, #tpu.memory_space<vmem>>, vector<512x512xbf16>
    %cst_10 = arith.constant dense<0.000000e+00> : vector<2x512xf32>
    %12 = tpu.matmul %10, %11, %cst_10 {dimension_numbers = #tpu.dot_dimension_numbers<[1], [0], [0], [1], [0, 0, 1, 1], [], []>} : vector<2x512xbf16>, vector<512x512xbf16>, vector<2x512xf32> -> vector<2x512xf32>
    %13 = arith.addf %9, %12 : vector<2x512xf32>
    %c0_11 = arith.constant 0 : index
    %c0_12 = arith.constant 0 : index
    %14 = vector.load %arg9[%c0_11, %c0_12] : memref<2x512xf32, #tpu.memory_space<vmem>>, vector<2x512xf32>
    tpu.vector_store %arg9[%c0_11, %c0_12], %13 {strides = array<i32>} : memref<2x512xf32, #tpu.memory_space<vmem>>, vector<2x512xf32>,
    %c3_i32 = arith.constant 3 : i32
    %15 = arith.cmpi eq, %arg0, %c3_i32 : i32
    %16 = arith.extui %15 : i1 to i32
    %c0_i32_13 = arith.constant 0 : i32
    %17 = arith.cmpi ne, %16, %c0_i32_13 : i32
    scf.if %17 {
      %c0_14 = arith.constant 0 : index
      %c0_15 = arith.constant 0 : index
      %18 = vector.load %arg9[%c0_14, %c0_15] : memref<2x512xf32, #tpu.memory_space<vmem>>, vector<2x512xf32>
      %c0_16 = arith.constant 0 : index
      %c0_17 = arith.constant 0 : index
      %19 = vector.load %arg5[%c0_16, %c0_17] : memref<1x512xf32, #tpu.memory_space<vmem>>, vector<1x512xf32>
      %20 = vector.broadcast %19 : vector<1x512xf32> to vector<2x512xf32>
      %21 = arith.addf %18, %20 : vector<2x512xf32>
      %22 = arith.truncf %21 : vector<2x512xf32> to vector<2x512xbf16>
      %c0_18 = arith.constant 0 : index
      %c0_19 = arith.constant 0 : index
      %23 = vector.load %arg6[%c0_18, %c0_19] : memref<512x9xbf16, #tpu.memory_space<vmem>>, vector<512x9xbf16>
      %cst_20 = arith.constant dense<0.000000e+00> : vector<2x9xf32>
      %24 = tpu.matmul %22, %23, %cst_20 {dimension_numbers = #tpu.dot_dimension_numbers<[1], [0], [0], [1], [0, 0, 1, 1], [], []>} : vector<2x512xbf16>, vector<512x9xbf16>, vector<2x9xf32> -> vector<2x9xf32>
      %c0_21 = arith.constant 0 : index
      %c0_22 = arith.constant 0 : index
      %25 = vector.load %arg7[%c0_21, %c0_22] : memref<1x9xf32, #tpu.memory_space<vmem>>, vector<1x9xf32>
      %26 = vector.broadcast %25 : vector<1x9xf32> to vector<2x9xf32>
      %27 = arith.addf %24, %26 : vector<2x9xf32>
      %28 = tpu.iota {dimensions = array<i32: 1>} : vector<2x9xi32>
      %c3_i32_23 = arith.constant 3 : i32
      %29 = vector.broadcast %c3_i32_23 : i32 to vector<2x9xi32>
      %30 = arith.cmpi slt, %28, %29 : vector<2x9xi32>
      %c6_i32 = arith.constant 6 : i32
      %31 = vector.broadcast %c6_i32 : i32 to vector<2x9xi32>
      %32 = arith.cmpi sge, %28, %31 : vector<2x9xi32>
      %cst_24 = arith.constant 0xFF800000 : f32
      %33 = vector.broadcast %cst_24 : f32 to vector<2x9xf32>
      %34 = arith.select %30, %27, %33 : vector<2x9xi1>, vector<2x9xf32>
      %cst_25 = arith.constant dense<0xFF800000> : vector<2xf32>
      %35 = vector.multi_reduction <maximumf>, %34, %cst_25 [1] : vector<2x9xf32> to vector<2xf32>
      %36 = vector.shape_cast %35 : vector<2xf32> to vector<2x1xf32>
      %37 = vector.broadcast %36 : vector<2x1xf32> to vector<2x9xf32>
      %38 = arith.subf %27, %37 : vector<2x9xf32>
      %39 = math.exp %38 : vector<2x9xf32>
      %cst_26 = arith.constant 0.000000e+00 : f32
      %40 = vector.broadcast %cst_26 : f32 to vector<2x9xf32>
      %41 = arith.select %30, %39, %40 : vector<2x9xi1>, vector<2x9xf32>
      %cst_27 = arith.constant dense<0.000000e+00> : vector<2xf32>
      %42 = vector.multi_reduction <add>, %41, %cst_27 [1] : vector<2x9xf32> to vector<2xf32>
      %43 = vector.shape_cast %42 : vector<2xf32> to vector<2x1xf32>
      %44 = tpu.reciprocal %43 {approx = true} : vector<2x1xf32> -> vector<2x1xf32>
      %45 = vector.broadcast %44 : vector<2x1xf32> to vector<2x9xf32>
      %46 = arith.mulf %41, %45 : vector<2x9xf32>
      %47 = math.exp %27 : vector<2x9xf32>
      %48 = arith.select %32, %47, %27 : vector<2x9xi1>, vector<2x9xf32>
      %49 = arith.select %30, %46, %48 : vector<2x9xi1>, vector<2x9xf32>
      %c0_28 = arith.constant 0 : index
      %c0_29 = arith.constant 0 : index
      %50 = vector.load %arg8[%c0_28, %c0_29] : memref<2x9xf32, #tpu.memory_space<vmem>>, vector<2x9xf32>
      tpu.vector_store %arg8[%c0_28, %c0_29], %49 {strides = array<i32>} : memref<2x9xf32, #tpu.memory_space<vmem>>, vector<2x9xf32>,
    } else {
    }
    return
  }
  func.func @transform_0(%arg0: i32) -> (i32, i32) {
    %c0_i32 = arith.constant 0 : i32
    %c0_i32_0 = arith.constant 0 : i32
    %c0_i32_1 = arith.constant 0 : i32
    return %c0_i32, %c0_i32_0 : i32, i32
  }
  func.func @transform_1(%arg0: i32) -> (i32, i32) {
    %c0_i32 = arith.constant 0 : i32
    %c0_i32_0 = arith.constant 0 : i32
    return %c0_i32, %arg0 : i32, i32
  }
  func.func @transform_2(%arg0: i32) -> (i32, i32) {
    %c0_i32 = arith.constant 0 : i32
    %c0_i32_0 = arith.constant 0 : i32
    return %c0_i32, %arg0 : i32, i32
  }
  func.func @transform_3(%arg0: i32) -> (i32, i32) {
    %c0_i32 = arith.constant 0 : i32
    %c0_i32_0 = arith.constant 0 : i32
    return %arg0, %c0_i32 : i32, i32
  }
  func.func @transform_4(%arg0: i32) -> (i32, i32) {
    %c0_i32 = arith.constant 0 : i32
    %c0_i32_0 = arith.constant 0 : i32
    %c0_i32_1 = arith.constant 0 : i32
    return %c0_i32, %c0_i32_0 : i32, i32
  }
  func.func @transform_5(%arg0: i32) -> (i32, i32) {
    %c0_i32 = arith.constant 0 : i32
    %c0_i32_0 = arith.constant 0 : i32
    %c0_i32_1 = arith.constant 0 : i32
    return %c0_i32, %c0_i32_0 : i32, i32
  }
  func.func @transform_6(%arg0: i32) -> (i32, i32) {
    %c0_i32 = arith.constant 0 : i32
    %c0_i32_0 = arith.constant 0 : i32
    %c0_i32_1 = arith.constant 0 : i32
    return %c0_i32, %c0_i32_0 : i32, i32
  }
  func.func @transform_7(%arg0: i32) -> (i32, i32) {
    %c0_i32 = arith.constant 0 : i32
    %c0_i32_0 = arith.constant 0 : i32
    %c0_i32_1 = arith.constant 0 : i32
    return %c0_i32, %c0_i32_0 : i32, i32
  }
}

</mosaic_0001>

<bundles_post_ra>
// kernel: mdn_bottleneck_head_forward.1
= control target key start
LH: loop header
LB: loop body
LE: loop exit
PB: predicated region body
PF: predicated region fallthrough
CT: control target
= control target key end

     0   :  { %12 = vsyncpa [#allocation5], 0  ;;  %s2676_s24 = smov 0   ;;  %s2678_s25 = smov 0   ;;  %s3087_s0 = inlined_call_operand.vmem [shape: bf16[2,64], index: 0, kind: input, shape index: {}]   ;;  %s3088_s1 = inlined_call_operand.vmem [shape: bf16[64,2048], index: 1, kind: input, shape index: {}]   ;;  %s3089_s2 = inlined_call_operand.vmem [shape: f32[1,2048], index: 2, kind: input, shape index: {}]   ;;  %s3090_s3 = inlined_call_operand.vmem [shape: bf16[2048,512], index: 3, kind: input, shape index: {}]   ;;  %s3091_s4 = inlined_call_operand.vmem [shape: f32[1,512], index: 4, kind: input, shape index: {}]   ;;  %s3092_s5 = inlined_call_operand.vmem [shape: bf16[512,9], index: 5, kind: input, shape index: {}]   ;;  %s3093_s6 = inlined_call_operand.vmem [shape: f32[1,9], index: 6, kind: input, shape index: {}]   ;;  %s3094_s7 = inlined_call_operand.hbm [shape: f32[2,9], index: 7, kind: output, shape index: {}]  }
   0x1   :  { %s2680_s26 = smov 0  }
   0x2 LB: > { %s2692_s27 = sadd.s32 4294967295, %s2630_s26   ;;  %s2695_s28 = sadd.s32 1, %s2630_s26   ;;  %s2630_s26 = sphi %s2680_s26, %s3097_s26   ;;  %s2626_s25 = sphi %s2678_s25, %s3096_s25   ;;  %s2622_s24 = sphi %s2676_s24, %s3095_s24  }
   0x3   : > { %s43_s29 = ssub.s32 %s2630_s26, %s2695_s28  ;;  %s46_s30 = sadd.s32 1, %s2626_s25 }
   0x4   : > { %p44_p0 = scmp.eq.s32.totalorder %s43_s29, 0  ;;  %p53_p1 = scmp.ne.s32.totalorder %s2626_s25, %s2622_s24 }
   0x5   : > { %p54_p2 = scmp.eq.s32.totalorder %s2630_s26, 0  ;;  %p2041_p4 = scmp.ge.s32.totalorder %s2630_s26, 4 }
   0x6   : > { %s2704_s8 = scalar_select %p44_p0, %s2626_s25, %s46_s30  }
   0x7   : > { %p55_p3 = por %p54_p2, %p53_p1  ;;  %227 = sbr.rel (%p2041_p4) target bundleno = 26 (0x1a), region = 32 }
   0xe   : > { %230 = sbr.rel (!%p55_p3) target bundleno = 26 (0x1a), region = 36  ;;  %s232_s9 = sand.u32 (%p55_p3), 1, %s2626_s25  }
   0xf   : > { %s2236_s10 = sshll.u32 (%p55_p3), %s2630_s26, 4  ;;  %s2042_s11 = sshll.u32 (%p55_p3), %s232_s9, 7 }
  0x10   : > { %s2712_s14 = scalar_lea.vmem (%p55_p3), %s3088_s1, %s2236_s10  ;;  %s234_s15 = scalar_lea.vmem (%p55_p3), [#allocation3], %s2042_s11 }
  0x11   : > { %v250_v0 = vld [vmem:[%s2712_s14] sm:$0xff] (%p55_p3)  ;;  %v252_v1 = vld [vmem:[%s2712_s14 + $0x8] sm:$0xff] (%p55_p3) }
  0x12   : > { %v254_v2 = vld [vmem:[%s2712_s14 + $0x40] sm:$0xff] (%p55_p3)  ;;  %251 = vst [vmem:[%s234_s15] sm:$0xff] (%p55_p3), %v250_v0  ;;  %253 = vst [vmem:[%s234_s15 + $0x8] sm:$0xff] (%p55_p3), %v252_v1  ;;  %v256_v3 = vld [vmem:[%s2712_s14 + $0x48] sm:$0xff] (%p55_p3) }
  0x13   : > { %255 = vst [vmem:[%s234_s15 + $0x10] sm:$0xff] (%p55_p3), %v254_v2  ;;  %v258_v4 = vld [vmem:[%s2712_s14 + $0x80] sm:$0xff] (%p55_p3)  ;;  %v260_v5 = vld [vmem:[%s2712_s14 + $0x88] sm:$0xff] (%p55_p3)  ;;  %257 = vst [vmem:[%s234_s15 + $0x18] sm:$0xff] (%p55_p3), %v256_v3 }
  0x14   : > { %259 = vst [vmem:[%s234_s15 + $0x20] sm:$0xff] (%p55_p3), %v258_v4  ;;  %261 = vst [vmem:[%s234_s15 + $0x28] sm:$0xff] (%p55_p3), %v260_v5  ;;  %v262_v6 = vld [vmem:[%s2712_s14 + $0xc0] sm:$0xff] (%p55_p3)  ;;  %v264_v7 = vld [vmem:[%s2712_s14 + $0xc8] sm:$0xff] (%p55_p3) }
  0x15   : > { %v266_v8 = vld [vmem:[%s2712_s14 + $0x100] sm:$0xff]  ;;  %263 = vst [vmem:[%s234_s15 + $0x30] sm:$0xff] %v262_v6  ;;  %265 = vst [vmem:[%s234_s15 + $0x38] sm:$0xff] %v264_v7  ;;  %v268_v9 = vld [vmem:[%s2712_s14 + $0x108] sm:$0xff] }
  0x16   : > { %267 = vst [vmem:[%s234_s15 + $0x40] sm:$0xff] %v266_v8  ;;  %v270_v10 = vld [vmem:[%s2712_s14 + $0x140] sm:$0xff]  ;;  %v272_v11 = vld [vmem:[%s2712_s14 + $0x148] sm:$0xff]  ;;  %269 = vst [vmem:[%s234_s15 + $0x48] sm:$0xff] %v268_v9 }
  0x17   : > { %271 = vst [vmem:[%s234_s15 + $0x50] sm:$0xff] %v270_v10  ;;  %273 = vst [vmem:[%s234_s15 + $0x58] sm:$0xff] %v272_v11  ;;  %v274_v12 = vld [vmem:[%s2712_s14 + $0x180] sm:$0xff]  ;;  %v276_v13 = vld [vmem:[%s2712_s14 + $0x188] sm:$0xff] }
  0x18   : > { %v278_v14 = vld [vmem:[%s2712_s14 + $0x1c0] sm:$0xff]  ;;  %275 = vst [vmem:[%s234_s15 + $0x60] sm:$0xff] %v274_v12  ;;  %277 = vst [vmem:[%s234_s15 + $0x68] sm:$0xff] %v276_v13  ;;  %v280_v15 = vld [vmem:[%s2712_s14 + $0x1c8] sm:$0xff] }
  0x19   : > { %279 = vst [vmem:[%s234_s15 + $0x70] sm:$0xff] %v278_v14  ;;  %281 = vst [vmem:[%s234_s15 + $0x78] sm:$0xff] %v280_v15 }
  0x1a PF: > { %p2045_p5 = scmp.ge.s32.totalorder %s2630_s26, 1  ;;  %p304_p6 = scmp.lt.s32.totalorder %s2630_s26, 5 }
  0x1c   : > { %p305_p7 = pnand %p2045_p5, %p304_p6 }
  0x1d   : > { %s311_s16 = sand.u32 (!%p305_p7), 1, %s2622_s24   ;;  %s2047_s17 = sshll.u32 (!%p305_p7), %s2692_s27, 2 }
  0x1e   : > { %308 = sbr.rel (%p305_p7) target bundleno = 1146 (0x47a), region = 67  ;;  %s2046_s18 = sshll.u32 (!%p305_p7), %s311_s16, 7 }
  0x1f   : > { %p349_p8 = scmp.lt.s32.totalorder (!%p305_p7), %s2047_s17, 15  ;;  %s2048_s19 = sshll.u32 (!%p305_p7), %s2692_s27, 6 }
  0x20   : > { %p354_p9 = scmp.lt.s32.totalorder (!%p305_p7), %s2048_s19, 255  ;;  %s2746_s24 = scalar_lea.vmem (!%p305_p7), [#allocation3], %s2046_s18 }
  0x21   : > { %p2051_p10 = scmp.ne.s32.totalorder (!%p305_p7), %s2692_s27, 0 }
  0x25   : > { %s3099_s17 = smov (!%p349_p8, %s2047_s17), 15  ;;  %s3101_s19 = smov (!%p354_p9, %s2048_s19), 255 }
  0x26   : > { %s351_s22 = scalar_lea.vmem %s3089_s2, %s3099_s17  ;;  %s2237_s23 = sshll.u32 %s3101_s19, 4  ;;  %v2632_v16 = vmov (!%p2051_p10), 0.0  }
  0x27   : > { %s2744_s30 = scalar_lea.vmem %s3090_s3, %s2237_s23  ;;  %364 = sbr.rel (%p2051_p10) target bundleno = 46 (0x2e), region = 75  ;;  %365 = vst [vmem:[#allocation2] sm:$0xff] (!%p2051_p10), %v2632_v16 }
  0x2e PF: > { %v2324_v17 = vld [vmem:[%s2746_s24 + $0x4] ss:$16 sps:$4 sm:$0xff]   ;;  %v2326_v18 = vld [vmem:[%s2746_s24] ss:$16 sps:$4 sm:$0xff]   ;;  %v2633_v19 = vmov 0   ;;  %vm485_vm0 = vcmask 523264  }
  0x2f   : > { %521 = vmatprep.mubr.bf16.mxu0 %v2633_v19  ;;  %562 = vmatprep.mubr.bf16.mxu1 %v2633_v19  ;;  %v2327_v20 = vld [vmem:[%s2746_s24 + $0x24] ss:$16 sps:$4 sm:$0xff]   ;;  %v2329_v21 = vld [vmem:[%s2746_s24 + $0x20] ss:$16 sps:$4 sm:$0xff]   ;;  %v2336_v24 = vld [vmem:[%s2746_s24 + $0xc] ss:$16 sps:$4 sm:$0xff]  }
  0x30   : > { %489 = vmatprep.subr.bf16.mxu0 %v2324_v17  ;;  %v2330_v22 = vld [vmem:[%s2746_s24 + $0x44] ss:$16 sps:$4 sm:$0xff]   ;;  %v2332_v23 = vld [vmem:[%s2746_s24 + $0x40] ss:$16 sps:$4 sm:$0xff]   ;;  %v2338_v25 = vld [vmem:[%s2746_s24 + $0x8] ss:$16 sps:$4 sm:$0xff]   ;;  %530 = vmatprep.subr.bf16.mxu1 %v2336_v24 }
  0x31   : > { %490 = vmatpush1.bf16.msra.mxu0 %v2326_v18  ;;  %v2339_v26 = vld [vmem:[%s2746_s24 + $0x2c] ss:$16 sps:$4 sm:$0xff]   ;;  %v2333_v27 = vld [vmem:[%s2746_s24 + $0x64] ss:$16 sps:$4 sm:$0xff]   ;;  %531 = vmatpush1.bf16.msra.mxu1 %v2338_v25  ;;  %v2341_v28 = vld [vmem:[%s2746_s24 + $0x28] ss:$16 sps:$4 sm:$0xff]  }
  0x32   : > { %491 = vmatprep.subr.bf16.mxu0 %v2327_v20  ;;  %532 = vmatprep.subr.bf16.mxu1 %v2339_v26  ;;  %v2342_v29 = vld [vmem:[%s2746_s24 + $0x4c] ss:$16 sps:$4 sm:$0xff]   ;;  %v2335_v30 = vld [vmem:[%s2746_s24 + $0x60] ss:$16 sps:$4 sm:$0xff]   ;;  %v2344_v32 = vld [vmem:[%s2746_s24 + $0x48] ss:$16 sps:$4 sm:$0xff]  }
  0x33   : > { %v2350_v31 = vld [vmem:[%s2744_s30 + $0x4] ss:$16 sps:$4 sm:$0xff]   ;;  %v366_v33 = vld [vmem:[%s3087_s0] sm:$0x1]  ;;  %v2353_v38 = vld [vmem:[%s2744_s30 + $0xc] ss:$16 sps:$4 sm:$0xff]  }
  0x34   : > { %v2345_v34 = vld [vmem:[%s2746_s24 + $0x6c] ss:$16 sps:$4 sm:$0xff]   ;;  %v2348_v35 = vld [vmem:[%s2744_s30] ss:$16 sps:$4 sm:$0xff]   ;;  %v2351_v41 = vld [vmem:[%s2744_s30 + $0x8] ss:$16 sps:$4 sm:$0xff]  }
  0x35   : > { %492 = vmatpush1.bf16.msra.mxu0 %v2329_v21  ;;  %533 = vmatpush1.bf16.msra.mxu1 %v2341_v28  ;;  %v2356_v36 = vld [vmem:[%s2744_s30 + $0x24] ss:$16 sps:$4 sm:$0xff]   ;;  %v2347_v37 = vld [vmem:[%s2746_s24 + $0x68] ss:$16 sps:$4 sm:$0xff]   ;;  %v2359_v42 = vld [vmem:[%s2744_s30 + $0x2c] ss:$16 sps:$4 sm:$0xff]  }
  0x36   : > { %493 = vmatprep.subr.bf16.mxu0 %v2330_v22  ;;  %534 = vmatprep.subr.bf16.mxu1 %v2342_v29  ;;  %v2354_v39 = vld [vmem:[%s2744_s30 + $0x20] ss:$16 sps:$4 sm:$0xff]   ;;  %v2362_v40 = vld [vmem:[%s2744_s30 + $0x44] ss:$16 sps:$4 sm:$0xff]   ;;  %v2357_v45 = vld [vmem:[%s2744_s30 + $0x28] ss:$16 sps:$4 sm:$0xff]  }
  0x37   : > { %v2360_v43 = vld [vmem:[%s2744_s30 + $0x40] ss:$16 sps:$4 sm:$0xff]   ;;  %v2368_v44 = vld [vmem:[%s2744_s30 + $0x64] ss:$16 sps:$4 sm:$0xff]   ;;  %v2365_v46 = vld [vmem:[%s2744_s30 + $0x4c] ss:$16 sps:$4 sm:$0xff]  }
  0x38   : > { %v2366_v47 = vld [vmem:[%s2744_s30 + $0x60] ss:$16 sps:$4 sm:$0xff]   ;;  %v2374_v48 = vld [vmem:[%s2744_s30 + $0x84] ss:$16 sps:$4 sm:$0xff]   ;;  %v2363_v49 = vld [vmem:[%s2744_s30 + $0x48] ss:$16 sps:$4 sm:$0xff]  }
  0x39   : > { %494 = vmatpush1.bf16.msra.mxu0 %v2332_v23  ;;  %535 = vmatpush1.bf16.msra.mxu1 %v2344_v32  ;;  %v2371_v50 = vld [vmem:[%s2744_s30 + $0x6c] ss:$16 sps:$4 sm:$0xff]   ;;  %v2372_v51 = vld [vmem:[%s2744_s30 + $0x80] ss:$16 sps:$4 sm:$0xff]   ;;  %v2380_v52 = vld [vmem:[%s2744_s30 + $0xa4] ss:$16 sps:$4 sm:$0xff]  }
  0x3a   : > { %495 = vmatprep.subr.bf16.mxu0 %v2333_v27  ;;  %536 = vmatprep.subr.bf16.mxu1 %v2345_v34  ;;  %v2369_v53 = vld [vmem:[%s2744_s30 + $0x68] ss:$16 sps:$4 sm:$0xff]   ;;  %v2377_v54 = vld [vmem:[%s2744_s30 + $0x8c] ss:$16 sps:$4 sm:$0xff]   ;;  %v2378_v55 = vld [vmem:[%s2744_s30 + $0xa0] ss:$16 sps:$4 sm:$0xff]  }
  0x3b   : > { %v2386_v56 = vld [vmem:[%s2744_s30 + $0xc4] ss:$16 sps:$4 sm:$0xff]   ;;  %v2375_v57 = vld [vmem:[%s2744_s30 + $0x88] ss:$16 sps:$4 sm:$0xff]   ;;  %v2383_v58 = vld [vmem:[%s2744_s30 + $0xac] ss:$16 sps:$4 sm:$0xff]  }
  0x3c   : > { %v2384_v59 = vld [vmem:[%s2744_s30 + $0xc0] ss:$16 sps:$4 sm:$0xff]   ;;  %v2392_v60 = vld [vmem:[%s2744_s30 + $0xe4] ss:$16 sps:$4 sm:$0xff]   ;;  %v2381_v61 = vld [vmem:[%s2744_s30 + $0xa8] ss:$16 sps:$4 sm:$0xff]  }
  0x3d   : > { %496 = vmatpush1.bf16.msra.mxu0 %v2335_v30  ;;  %537 = vmatpush1.bf16.msra.mxu1 %v2347_v37  ;;  %v2389_v62 = vld [vmem:[%s2744_s30 + $0xcc] ss:$16 sps:$4 sm:$0xff]   ;;  %v2390_v63 = vld [vmem:[%s2744_s30 + $0xe0] ss:$16 sps:$4 sm:$0xff]   ;;  %v2398_v0 = vld [vmem:[%s2744_s30 + $0x104] ss:$16 sps:$4 sm:$0xff]   ;;  %v385_v37 = vlaneseq }
  0x3e   : > { %1344 = vmatprep.subr.bf16.mxu0 %v2350_v31  ;;  %1426 = vmatprep.subr.bf16.mxu1 %v2353_v38  ;;  %v2387_v1 = vld [vmem:[%s2744_s30 + $0xc8] ss:$16 sps:$4 sm:$0xff]   ;;  %v2395_v2 = vld [vmem:[%s2744_s30 + $0xec] ss:$16 sps:$4 sm:$0xff]   ;;  %v2396_v3 = vld [vmem:[%s2744_s30 + $0x100] ss:$16 sps:$4 sm:$0xff]  }
  0x3f   : > { %v2404_v4 = vld [vmem:[%s2744_s30 + $0x124] ss:$16 sps:$4 sm:$0xff]   ;;  %v2393_v5 = vld [vmem:[%s2744_s30 + $0xe8] ss:$16 sps:$4 sm:$0xff]   ;;  %v2401_v6 = vld [vmem:[%s2744_s30 + $0x10c] ss:$16 sps:$4 sm:$0xff]  }
  0x40   : > { %2068 = vmatmul.mubr.msk.bf16.vlgmr.msra.gmra.mrb[0].mxu0 %vm485_vm0, %v366_v33  ;;  %2069 = vmatmul.mubr.msk.bf16.vlgmr.msra.gmra.mrb[0].mxu1 %vm485_vm0, %v366_v33  ;;  %v2402_v7 = vld [vmem:[%s2744_s30 + $0x120] ss:$16 sps:$4 sm:$0xff]   ;;  %v2399_v8 = vld [vmem:[%s2744_s30 + $0x108] ss:$16 sps:$4 sm:$0xff]   ;;  %v2410_v9 = vld [vmem:[%s2744_s30 + $0x144] ss:$16 sps:$4 sm:$0xff]  }
  0x41   : > { %1345 = vmatpush1.bf16.msra.mxu0 %v2348_v35  ;;  %1427 = vmatpush1.bf16.msra.mxu1 %v2351_v41  ;;  %v2407_v10 = vld [vmem:[%s2744_s30 + $0x12c] ss:$16 sps:$4 sm:$0xff]   ;;  %v2408_v11 = vld [vmem:[%s2744_s30 + $0x140] ss:$16 sps:$4 sm:$0xff]   ;;  %v2416_v12 = vld [vmem:[%s2744_s30 + $0x164] ss:$16 sps:$4 sm:$0xff]  }
  0x42   : > { %1346 = vmatprep.subr.bf16.mxu0 %v2356_v36  ;;  %1428 = vmatprep.subr.bf16.mxu1 %v2359_v42  ;;  %v2405_v13 = vld [vmem:[%s2744_s30 + $0x128] ss:$16 sps:$4 sm:$0xff]   ;;  %v2413_v14 = vld [vmem:[%s2744_s30 + $0x14c] ss:$16 sps:$4 sm:$0xff]   ;;  %v2414_v15 = vld [vmem:[%s2744_s30 + $0x160] ss:$16 sps:$4 sm:$0xff]  }
  0x43   : > { %v2422_v16 = vld [vmem:[%s2744_s30 + $0x184] ss:$16 sps:$4 sm:$0xff]   ;;  %v2411_v17 = vld [vmem:[%s2744_s30 + $0x148] ss:$16 sps:$4 sm:$0xff]   ;;  %v2419_v18 = vld [vmem:[%s2744_s30 + $0x16c] ss:$16 sps:$4 sm:$0xff]  }
  0x44   : > { %v2420_v19 = vld [vmem:[%s2744_s30 + $0x180] ss:$16 sps:$4 sm:$0xff]   ;;  %v2428_v20 = vld [vmem:[%s2744_s30 + $0x1a4] ss:$16 sps:$4 sm:$0xff]   ;;  %v2417_v21 = vld [vmem:[%s2744_s30 + $0x168] ss:$16 sps:$4 sm:$0xff]  }
  0x45   : > { %1347 = vmatpush1.bf16.msra.mxu0 %v2354_v39  ;;  %1429 = vmatpush1.bf16.msra.mxu1 %v2357_v45  ;;  %v2425_v22 = vld [vmem:[%s2744_s30 + $0x18c] ss:$16 sps:$4 sm:$0xff]   ;;  %v2426_v23 = vld [vmem:[%s2744_s30 + $0x1a0] ss:$16 sps:$4 sm:$0xff]   ;;  %v2434_v24 = vld [vmem:[%s2744_s30 + $0x1c4] ss:$16 sps:$4 sm:$0xff]  }
  0x46   : > { %1348 = vmatprep.subr.bf16.mxu0 %v2362_v40  ;;  %1430 = vmatprep.subr.bf16.mxu1 %v2365_v46  ;;  %v2423_v25 = vld [vmem:[%s2744_s30 + $0x188] ss:$16 sps:$4 sm:$0xff]   ;;  %v2431_v26 = vld [vmem:[%s2744_s30 + $0x1ac] ss:$16 sps:$4 sm:$0xff]   ;;  %v2432_v27 = vld [vmem:[%s2744_s30 + $0x1c0] ss:$16 sps:$4 sm:$0xff]  }
  0x47   : > { %v2429_v28 = vld [vmem:[%s2744_s30 + $0x1a8] ss:$16 sps:$4 sm:$0xff]   ;;  %v2437_v29 = vld [vmem:[%s2744_s30 + $0x1cc] ss:$16 sps:$4 sm:$0xff]   ;;  %v2440_v31 = vld [vmem:[%s2744_s30 + $0x1e4] ss:$16 sps:$4 sm:$0xff]  }
  0x48   : > { %v2435_v30 = vld [vmem:[%s2744_s30 + $0x1c8] ss:$16 sps:$4 sm:$0xff]   ;;  %v2443_v32 = vld [vmem:[%s2744_s30 + $0x1ec] ss:$16 sps:$4 sm:$0xff]   ;;  %v2438_v33 = vld [vmem:[%s2744_s30 + $0x1e0] ss:$16 sps:$4 sm:$0xff]  }
  0x49   : > { %1349 = vmatpush1.bf16.msra.mxu0 %v2360_v43  ;;  %1431 = vmatpush1.bf16.msra.mxu1 %v2363_v49  ;;  %v2441_v34 = vld [vmem:[%s2744_s30 + $0x1e8] ss:$16 sps:$4 sm:$0xff]   ;;  %v2446_v35 = vld [vmem:[%s2744_s30 + $0x204] ss:$16 sps:$4 sm:$0xff]   ;;  %v2449_v36 = vld [vmem:[%s2744_s30 + $0x20c] ss:$16 sps:$4 sm:$0xff]  }
  0x4a   : > { %1350 = vmatprep.subr.bf16.mxu0 %v2368_v44  ;;  %1432 = vmatprep.subr.bf16.mxu1 %v2371_v50  ;;  %v2837_v38 = vshrl.u32 %v385_v37, 7  ;;  %v2845_v40 = vld [vmem:[%s351_s22] sm:$0xf]  ;;  %p2198_p11 = scmp.ne.s32.totalorder %s2692_s27, 3 }
  0x4b   : > { %vm1948_vm2 = vcmask (!%p2198_p11), 66560  }
  0x4c   : > { %v387_v39 = vsub.s32 0, %v2837_v38  ;;  %v391_v41 = vsub.s32 1, %v2837_v38  ;;  %v399_v45 = vsub.s32 3, %v2837_v38 }
  0x4d   : > { %1351 = vmatpush1.bf16.msra.mxu0 %v2366_v47  ;;  %1433 = vmatpush1.bf16.msra.mxu1 %v2369_v53  ;;  %v2447_v53 = vld [vmem:[%s2744_s30 + $0x208] ss:$16 sps:$4 sm:$0xff]  }
  0x4e   : > { %1352 = vmatprep.subr.bf16.mxu0 %v2374_v48  ;;  %1434 = vmatprep.subr.bf16.mxu1 %v2377_v54  ;;  %v388_v42 = vrot.slane %v2845_v40, %v387_v39  ;;  %v392_v43 = vrot.slane %v2845_v40, %v391_v41  ;;  %v400_v54 = vrot.slane %v2845_v40, %v399_v45 }
  0x51   : > { %1353 = vmatpush1.bf16.msra.mxu0 %v2372_v51  ;;  %1435 = vmatpush1.bf16.msra.mxu1 %v2375_v57  ;;  %v2455_v57 = vld [vmem:[%s2744_s30 + $0x22c] ss:$16 sps:$4 sm:$0xff]  }
  0x52   : > { %1354 = vmatprep.subr.bf16.mxu0 %v2380_v52  ;;  %1436 = vmatprep.subr.bf16.mxu1 %v2383_v58  ;;  %v2444_v52 = vld [vmem:[%s2744_s30 + $0x200] ss:$16 sps:$4 sm:$0xff]  }
  0x55   : > { %1355 = vmatpush1.bf16.msra.mxu0 %v2378_v55  ;;  %1437 = vmatpush1.bf16.msra.mxu1 %v2381_v61  ;;  %v2453_v61 = vld [vmem:[%s2744_s30 + $0x228] ss:$16 sps:$4 sm:$0xff]  }
  0x56   : > { %1356 = vmatprep.subr.bf16.mxu0 %v2386_v56  ;;  %1438 = vmatprep.subr.bf16.mxu1 %v2389_v62  ;;  %v2452_v56 = vld [vmem:[%s2744_s30 + $0x224] ss:$16 sps:$4 sm:$0xff]  }
  0x59   : > { %1357 = vmatpush1.bf16.msra.mxu0 %v2384_v59  ;;  %1439 = vmatpush1.bf16.msra.mxu1 %v2387_v1  ;;  %v2461_v1 = vld [vmem:[%s2744_s30 + $0x24c] ss:$16 sps:$4 sm:$0xff]  }
  0x5a   : > { %1358 = vmatprep.subr.bf16.mxu0 %v2392_v60  ;;  %1440 = vmatprep.subr.bf16.mxu1 %v2395_v2  ;;  %v2450_v60 = vld [vmem:[%s2744_s30 + $0x220] ss:$16 sps:$4 sm:$0xff]  }
  0x5d   : > { %1359 = vmatpush1.bf16.msra.mxu0 %v2390_v63  ;;  %1441 = vmatpush1.bf16.msra.mxu1 %v2393_v5  ;;  %v2459_v5 = vld [vmem:[%s2744_s30 + $0x248] ss:$16 sps:$4 sm:$0xff]  }
  0x5e   : > { %1360 = vmatprep.subr.bf16.mxu0 %v2398_v0  ;;  %1442 = vmatprep.subr.bf16.mxu1 %v2401_v6  ;;  %v2458_v0 = vld [vmem:[%s2744_s30 + $0x244] ss:$16 sps:$4 sm:$0xff]  }
  0x5f   : > { %v2464_v6 = vld [vmem:[%s2744_s30 + $0x264] ss:$16 sps:$4 sm:$0xff]  }
  0x61   : > { %1361 = vmatpush1.bf16.msra.mxu0 %v2396_v3  ;;  %1443 = vmatpush1.bf16.msra.mxu1 %v2399_v8  ;;  %v2462_v8 = vld [vmem:[%s2744_s30 + $0x260] ss:$16 sps:$4 sm:$0xff]  }
  0x62   : > { %1362 = vmatprep.subr.bf16.mxu0 %v2404_v4  ;;  %1444 = vmatprep.subr.bf16.mxu1 %v2407_v10  ;;  %v2456_v4 = vld [vmem:[%s2744_s30 + $0x240] ss:$16 sps:$4 sm:$0xff]   ;;  %v2470_v10 = vld [vmem:[%s2744_s30 + $0x284] ss:$16 sps:$4 sm:$0xff]  }
  0x65   : > { %1363 = vmatpush1.bf16.msra.mxu0 %v2402_v7  ;;  %1445 = vmatpush1.bf16.msra.mxu1 %v2405_v13  ;;  %v2467_v7 = vld [vmem:[%s2744_s30 + $0x26c] ss:$16 sps:$4 sm:$0xff]   ;;  %v2471_v13 = vld [vmem:[%s2744_s30 + $0x288] ss:$16 sps:$4 sm:$0xff]  }
  0x66   : > { %1364 = vmatprep.subr.bf16.mxu0 %v2410_v9  ;;  %1446 = vmatprep.subr.bf16.mxu1 %v2413_v14  ;;  %v2465_v9 = vld [vmem:[%s2744_s30 + $0x268] ss:$16 sps:$4 sm:$0xff]   ;;  %v2476_v14 = vld [vmem:[%s2744_s30 + $0x2a4] ss:$16 sps:$4 sm:$0xff]  }
  0x69   : > { %1365 = vmatpush1.bf16.msra.mxu0 %v2408_v11  ;;  %1447 = vmatpush1.bf16.msra.mxu1 %v2411_v17  ;;  %v2473_v11 = vld [vmem:[%s2744_s30 + $0x28c] ss:$16 sps:$4 sm:$0xff]   ;;  %v2477_v17 = vld [vmem:[%s2744_s30 + $0x2a8] ss:$16 sps:$4 sm:$0xff]  }
  0x6a   : > { %1366 = vmatprep.subr.bf16.mxu0 %v2416_v12  ;;  %1448 = vmatprep.subr.bf16.mxu1 %v2419_v18  ;;  %v2468_v12 = vld [vmem:[%s2744_s30 + $0x280] ss:$16 sps:$4 sm:$0xff]   ;;  %v2482_v18 = vld [vmem:[%s2744_s30 + $0x2c4] ss:$16 sps:$4 sm:$0xff]  }
  0x6d   : > { %1367 = vmatpush1.bf16.msra.mxu0 %v2414_v15  ;;  %1449 = vmatpush1.bf16.msra.mxu1 %v2417_v21  ;;  %v2479_v15 = vld [vmem:[%s2744_s30 + $0x2ac] ss:$16 sps:$4 sm:$0xff]   ;;  %v2483_v21 = vld [vmem:[%s2744_s30 + $0x2c8] ss:$16 sps:$4 sm:$0xff]  }
  0x6e   : > { %1368 = vmatprep.subr.bf16.mxu0 %v2422_v16  ;;  %1450 = vmatprep.subr.bf16.mxu1 %v2425_v22  ;;  %v2474_v16 = vld [vmem:[%s2744_s30 + $0x2a0] ss:$16 sps:$4 sm:$0xff]   ;;  %v2488_v22 = vld [vmem:[%s2744_s30 + $0x2e4] ss:$16 sps:$4 sm:$0xff]  }
  0x71   : > { %1369 = vmatpush1.bf16.msra.mxu0 %v2420_v19  ;;  %1451 = vmatpush1.bf16.msra.mxu1 %v2423_v25  ;;  %v2485_v19 = vld [vmem:[%s2744_s30 + $0x2cc] ss:$16 sps:$4 sm:$0xff]   ;;  %v2489_v25 = vld [vmem:[%s2744_s30 + $0x2e8] ss:$16 sps:$4 sm:$0xff]  }
  0x72   : > { %1370 = vmatprep.subr.bf16.mxu0 %v2428_v20  ;;  %1452 = vmatprep.subr.bf16.mxu1 %v2431_v26  ;;  %v2480_v20 = vld [vmem:[%s2744_s30 + $0x2c0] ss:$16 sps:$4 sm:$0xff]   ;;  %v2494_v26 = vld [vmem:[%s2744_s30 + $0x304] ss:$16 sps:$4 sm:$0xff]  }
  0x75   : > { %1371 = vmatpush1.bf16.msra.mxu0 %v2426_v23  ;;  %1453 = vmatpush1.bf16.msra.mxu1 %v2429_v28  ;;  %v2491_v23 = vld [vmem:[%s2744_s30 + $0x2ec] ss:$16 sps:$4 sm:$0xff]   ;;  %v2492_v28 = vld [vmem:[%s2744_s30 + $0x300] ss:$16 sps:$4 sm:$0xff]  }
  0x76   : > { %1372 = vmatprep.subr.bf16.mxu0 %v2434_v24  ;;  %1454 = vmatprep.subr.bf16.mxu1 %v2437_v29  ;;  %v2486_v24 = vld [vmem:[%s2744_s30 + $0x2e0] ss:$16 sps:$4 sm:$0xff]   ;;  %v2495_v29 = vld [vmem:[%s2744_s30 + $0x308] ss:$16 sps:$4 sm:$0xff]  }
  0x79   : > { %1373 = vmatpush1.bf16.msra.mxu0 %v2432_v27  ;;  %1455 = vmatpush1.bf16.msra.mxu1 %v2435_v30  ;;  %v2497_v27 = vld [vmem:[%s2744_s30 + $0x30c] ss:$16 sps:$4 sm:$0xff]   ;;  %v2500_v30 = vld [vmem:[%s2744_s30 + $0x324] ss:$16 sps:$4 sm:$0xff]  }
  0x7a   : > { %1374 = vmatprep.subr.bf16.mxu0 %v2440_v31  ;;  %1456 = vmatprep.subr.bf16.mxu1 %v2443_v32  ;;  %v2503_v31 = vld [vmem:[%s2744_s30 + $0x32c] ss:$16 sps:$4 sm:$0xff]   ;;  %v2498_v32 = vld [vmem:[%s2744_s30 + $0x320] ss:$16 sps:$4 sm:$0xff]  }
  0x7d   : > { %1375 = vmatpush1.bf16.msra.mxu0 %v2438_v33  ;;  %1457 = vmatpush1.bf16.msra.mxu1 %v2441_v34  ;;  %v2501_v33 = vld [vmem:[%s2744_s30 + $0x328] ss:$16 sps:$4 sm:$0xff]   ;;  %v2506_v34 = vld [vmem:[%s2744_s30 + $0x344] ss:$16 sps:$4 sm:$0xff]  }
  0x7e   : > { %1385 = vmatprep.subr.bf16.mxu0 %v2446_v35  ;;  %1467 = vmatprep.subr.bf16.mxu1 %v2449_v36  ;;  %v2509_v35 = vld [vmem:[%s2744_s30 + $0x34c] ss:$16 sps:$4 sm:$0xff]   ;;  %v2504_v36 = vld [vmem:[%s2744_s30 + $0x340] ss:$16 sps:$4 sm:$0xff]  }
 0x113   : > { %v523_v44 = vpop.f32.mrb[0].mxu0  ;;  %v2862_v58 = vpop.f32.mrb[0].mxu1 }
 0x114   : > { %v524_v46 = vadd.f32 %v523_v44, %v388_v42  ;;  %v525_v47 = vpop.f32.mrb[1].mxu0  ;;  %v566_v59 = vpop.f32.mrb[1].mxu1  ;;  %v2507_v42 = vld [vmem:[%s2744_s30 + $0x348] ss:$16 sps:$4 sm:$0xff]   ;;  %v2515_v44 = vld [vmem:[%s2744_s30 + $0x36c] ss:$16 sps:$4 sm:$0xff]  }
 0x115   : > { %v526_v48 = vadd.f32 %v525_v47, %v392_v43  ;;  %v527_v49 = vpop.f32.mrb[2].mxu0  ;;  %v567_v62 = vadd.f32 %v566_v59, %v400_v54  ;;  %v568_v63 = vpop.f32.mrb[2].mxu1  ;;  %v2512_v43 = vld [vmem:[%s2744_s30 + $0x364] ss:$16 sps:$4 sm:$0xff]   ;;  %v2513_v47 = vld [vmem:[%s2744_s30 + $0x368] ss:$16 sps:$4 sm:$0xff]  }
 0x116   : > { %v528_v50 = vpop.f32.mrb[3].mxu0  ;;  %v572_v55 = vpack.c.bf16 %v524_v46, %v524_v46  ;;  %v569_v2 = vpop.f32.mrb[3].mxu1  ;;  %v2510_v46 = vld [vmem:[%s2744_s30 + $0x360] ss:$16 sps:$4 sm:$0xff]   ;;  %v2521_v49 = vld [vmem:[%s2744_s30 + $0x38c] ss:$16 sps:$4 sm:$0xff]  }
 0x117   : > { %v573_v51 = vpack.c.bf16 %v526_v48, %v526_v48  ;;  %v575_v3 = vpack.c.bf16 %v567_v62, %v567_v62  ;;  %v2518_v48 = vld [vmem:[%s2744_s30 + $0x384] ss:$16 sps:$4 sm:$0xff]   ;;  %v2516_v50 = vld [vmem:[%s2744_s30 + $0x380] ss:$16 sps:$4 sm:$0xff]   ;;  %v2533_v59 = vld [vmem:[%s2744_s30 + $0x3cc] ss:$16 sps:$4 sm:$0xff]  }
 0x118   : > { %v2522_v54 = vld [vmem:[%s2744_s30 + $0x3a0] ss:$16 sps:$4 sm:$0xff]   ;;  %v2536_v63 = vld [vmem:[%s2744_s30 + $0x3e4] ss:$16 sps:$4 sm:$0xff]   ;;  %v2537_v2 = vld [vmem:[%s2744_s30 + $0x3e8] ss:$16 sps:$4 sm:$0xff]  }
 0x119   : > { %1376 = vmatprep.mubr.bf16.mxu0 %v573_v51  ;;  %1458 = vmatprep.mubr.bf16.mxu1 %v573_v51  ;;  %v2519_v51 = vld [vmem:[%s2744_s30 + $0x388] ss:$16 sps:$4 sm:$0xff]  }
 0x11a   : > { %1377 = vmatmul.mubr.bf16.vlgmr.msra.gmra.mrb[4].mxu0 %v572_v55  ;;  %1459 = vmatmul.mubr.bf16.vlgmr.msra.gmra.mrb[4].mxu1 %v572_v55  ;;  %v2525_v55 = vld [vmem:[%s2744_s30 + $0x3a8] ss:$16 sps:$4 sm:$0xff]  }
 0x11b   : > { %1386 = vmatpush1.bf16.msra.mxu0 %v2444_v52  ;;  %1468 = vmatpush1.bf16.msra.mxu1 %v2447_v53  ;;  %v2524_v52 = vld [vmem:[%s2744_s30 + $0x3a4] ss:$16 sps:$4 sm:$0xff]   ;;  %v2527_v53 = vld [vmem:[%s2744_s30 + $0x3ac] ss:$16 sps:$4 sm:$0xff]  }
 0x11c   : > { %1387 = vmatprep.subr.bf16.mxu0 %v2452_v56  ;;  %1469 = vmatprep.subr.bf16.mxu1 %v2455_v57  ;;  %v395_v56 = vsub.s32 2, %v2837_v38  ;;  %v2530_v57 = vld [vmem:[%s2744_s30 + $0x3c4] ss:$16 sps:$4 sm:$0xff]  }
 0x11d   : > { %1417 = vmatprep.mubr.bf16.mxu0 %v575_v3  ;;  %1499 = vmatprep.mubr.bf16.mxu1 %v575_v3 }
 0x11e   : > { %v396_v62 = vrot.slane %v2845_v40, %v395_v56 }
 0x11f   : > { %1388 = vmatpush1.bf16.msra.mxu0 %v2450_v60  ;;  %1470 = vmatpush1.bf16.msra.mxu1 %v2453_v61  ;;  %v2528_v60 = vld [vmem:[%s2744_s30 + $0x3c0] ss:$16 sps:$4 sm:$0xff]   ;;  %v2531_v61 = vld [vmem:[%s2744_s30 + $0x3c8] ss:$16 sps:$4 sm:$0xff]  }
 0x120   : > { %1389 = vmatprep.subr.bf16.mxu0 %v2458_v0  ;;  %1471 = vmatprep.subr.bf16.mxu1 %v2461_v1  ;;  %v2539_v0 = vld [vmem:[%s2744_s30 + $0x3ec] ss:$16 sps:$4 sm:$0xff]   ;;  %v2534_v1 = vld [vmem:[%s2744_s30 + $0x3e0] ss:$16 sps:$4 sm:$0xff]   ;;  %v565_v3 = vadd.f32 %v2862_v58, %v396_v62 }
 0x121   : > { %v1537_v62 = vld [vmem:[%s3091_s4] sm:$0xf] (!%p2198_p11) }
 0x123   : > { %1390 = vmatpush1.bf16.msra.mxu0 %v2456_v4  ;;  %1472 = vmatpush1.bf16.msra.mxu1 %v2459_v5  ;;  %v574_v4 = vpack.c.bf16 %v565_v3, %v565_v3  ;;  %v2634_v5 = vmov 1983009808  }
 0x124   : > { %1391 = vmatprep.subr.bf16.mxu0 %v2464_v6  ;;  %1473 = vmatprep.subr.bf16.mxu1 %v2467_v7  ;;  %v1515_v6 = vunpack.c.l.s4 %v2634_v5 }
 0x126   : > { %v1516_v40 = vunpack.c.0.s8 %v1515_v6 }
 0x127   : > { %1392 = vmatpush1.bf16.msra.mxu0 %v2462_v8  ;;  %1474 = vmatpush1.bf16.msra.mxu1 %v2465_v9 }
 0x128   : > { %1393 = vmatprep.subr.bf16.mxu0 %v2470_v10  ;;  %1475 = vmatprep.subr.bf16.mxu1 %v2473_v11  ;;  %v2928_v9 = vsub.s32 %v1516_v40, %v2837_v38 }
 0x12b   : > { %1394 = vmatpush1.bf16.msra.mxu0 %v2468_v12  ;;  %1476 = vmatpush1.bf16.msra.mxu1 %v2471_v13 }
 0x12c   : > { %1395 = vmatprep.subr.bf16.mxu0 %v2476_v14  ;;  %1477 = vmatprep.subr.bf16.mxu1 %v2479_v15 }
 0x12f   : > { %1396 = vmatpush1.bf16.msra.mxu0 %v2474_v16  ;;  %1478 = vmatpush1.bf16.msra.mxu1 %v2477_v17 }
 0x130   : > { %1397 = vmatprep.subr.bf16.mxu0 %v2482_v18  ;;  %1479 = vmatprep.subr.bf16.mxu1 %v2485_v19  ;;  %v571_v19 = vld [vmem:[#allocation2] sm:$0xff] }
 0x133   : > { %1398 = vmatpush1.bf16.msra.mxu0 %v2480_v20  ;;  %1480 = vmatpush1.bf16.msra.mxu1 %v2483_v21 }
 0x134   : > { %1399 = vmatprep.subr.bf16.mxu0 %v2488_v22  ;;  %1481 = vmatprep.subr.bf16.mxu1 %v2491_v23  ;;  %v2540_v22 = vld [vmem:[%s3092_s5 + $0x40] sm:$0xff] (!%p2198_p11)  }
 0x135   : > { %v2541_v23 = vld [vmem:[%s3092_s5 + $0xc0] sm:$0xff] (!%p2198_p11)  }
 0x137   : > { %1400 = vmatpush1.bf16.msra.mxu0 %v2486_v24  ;;  %1482 = vmatpush1.bf16.msra.mxu1 %v2489_v25  ;;  %v2542_v24 = vld [vmem:[%s3092_s5] sm:$0xff] (!%p2198_p11)  }
 0x138   : > { %1401 = vmatprep.subr.bf16.mxu0 %v2494_v26  ;;  %1483 = vmatprep.subr.bf16.mxu1 %v2497_v27  ;;  %v2543_v25 = vld [vmem:[%s3092_s5 + $0x80] sm:$0xff] (!%p2198_p11)   ;;  %v2544_v26 = vld [vmem:[%s3092_s5 + $0x48] sm:$0xff] (!%p2198_p11)  }
 0x139   : > { %v2545_v27 = vld [vmem:[%s3092_s5 + $0xc8] sm:$0xff] (!%p2198_p11)  }
 0x13b   : > { %1402 = vmatpush1.bf16.msra.mxu0 %v2492_v28  ;;  %1484 = vmatpush1.bf16.msra.mxu1 %v2495_v29  ;;  %v2546_v28 = vld [vmem:[%s3092_s5 + $0x8] sm:$0xff] (!%p2198_p11)  }
 0x13c   : > { %1403 = vmatprep.subr.bf16.mxu0 %v2500_v30  ;;  %1485 = vmatprep.subr.bf16.mxu1 %v2503_v31  ;;  %v2547_v29 = vld [vmem:[%s3092_s5 + $0x88] sm:$0xff] (!%p2198_p11)   ;;  %v2548_v30 = vld [vmem:[%s3092_s5 + $0x50] sm:$0xff] (!%p2198_p11)  }
 0x13d   : > { %v2549_v31 = vld [vmem:[%s3092_s5 + $0xd0] sm:$0xff] (!%p2198_p11)  }
 0x13f   : > { %1404 = vmatpush1.bf16.msra.mxu0 %v2498_v32  ;;  %1486 = vmatpush1.bf16.msra.mxu1 %v2501_v33  ;;  %v2550_v32 = vld [vmem:[%s3092_s5 + $0x10] sm:$0xff] (!%p2198_p11)  }
 0x140   : > { %1405 = vmatprep.subr.bf16.mxu0 %v2506_v34  ;;  %1487 = vmatprep.subr.bf16.mxu1 %v2509_v35  ;;  %v2551_v33 = vld [vmem:[%s3092_s5 + $0x90] sm:$0xff] (!%p2198_p11)   ;;  %v2552_v34 = vld [vmem:[%s3092_s5 + $0x58] sm:$0xff] (!%p2198_p11)  }
 0x141   : > { %v2553_v35 = vld [vmem:[%s3092_s5 + $0xd8] sm:$0xff] (!%p2198_p11)  }
 0x143   : > { %1406 = vmatpush1.bf16.msra.mxu0 %v2504_v36  ;;  %1488 = vmatpush1.bf16.msra.mxu1 %v2507_v42  ;;  %v2554_v36 = vld [vmem:[%s3092_s5 + $0x18] sm:$0xff] (!%p2198_p11)  }
 0x144   : > { %1407 = vmatprep.subr.bf16.mxu0 %v2512_v43  ;;  %1489 = vmatprep.subr.bf16.mxu1 %v2515_v44  ;;  %v2555_v42 = vld [vmem:[%s3092_s5 + $0x98] sm:$0xff] (!%p2198_p11)   ;;  %v2556_v43 = vld [vmem:[%s3092_s5 + $0x60] sm:$0xff] (!%p2198_p11)  }
 0x145   : > { %v2557_v44 = vld [vmem:[%s3092_s5 + $0xe0] sm:$0xff] (!%p2198_p11)  }
 0x147   : > { %1408 = vmatpush1.bf16.msra.mxu0 %v2510_v46  ;;  %1490 = vmatpush1.bf16.msra.mxu1 %v2513_v47  ;;  %v2558_v46 = vld [vmem:[%s3092_s5 + $0x20] sm:$0xff] (!%p2198_p11)  }
 0x148   : > { %1409 = vmatprep.subr.bf16.mxu0 %v2518_v48  ;;  %1491 = vmatprep.subr.bf16.mxu1 %v2521_v49  ;;  %v2559_v47 = vld [vmem:[%s3092_s5 + $0xa0] sm:$0xff] (!%p2198_p11)   ;;  %v2560_v48 = vld [vmem:[%s3092_s5 + $0x68] sm:$0xff] (!%p2198_p11)  }
 0x149   : > { %v2561_v49 = vld [vmem:[%s3092_s5 + $0xe8] sm:$0xff] (!%p2198_p11)  }
 0x14b   : > { %1410 = vmatpush1.bf16.msra.mxu0 %v2516_v50  ;;  %1492 = vmatpush1.bf16.msra.mxu1 %v2519_v51  ;;  %v2562_v50 = vld [vmem:[%s3092_s5 + $0x28] sm:$0xff] (!%p2198_p11)  }
 0x14c   : > { %1411 = vmatprep.subr.bf16.mxu0 %v2524_v52  ;;  %1493 = vmatprep.subr.bf16.mxu1 %v2527_v53  ;;  %v2563_v51 = vld [vmem:[%s3092_s5 + $0xa8] sm:$0xff] (!%p2198_p11)   ;;  %v2564_v52 = vld [vmem:[%s3092_s5 + $0x70] sm:$0xff] (!%p2198_p11)  }
 0x14d   : > { %v2565_v53 = vld [vmem:[%s3092_s5 + $0xf0] sm:$0xff] (!%p2198_p11)  }
 0x14f   : > { %1412 = vmatpush1.bf16.msra.mxu0 %v2522_v54  ;;  %1494 = vmatpush1.bf16.msra.mxu1 %v2525_v55  ;;  %v2566_v54 = vld [vmem:[%s3092_s5 + $0x30] sm:$0xff] (!%p2198_p11)  }
 0x150   : > { %1413 = vmatprep.subr.bf16.mxu0 %v2530_v57  ;;  %1495 = vmatprep.subr.bf16.mxu1 %v2533_v59  ;;  %v2567_v55 = vld [vmem:[%s3092_s5 + $0xb0] sm:$0xff] (!%p2198_p11)   ;;  %v2568_v57 = vld [vmem:[%s3092_s5 + $0x78] sm:$0xff] (!%p2198_p11)  }
 0x151   : > { %v2569_v59 = vld [vmem:[%s3092_s5 + $0xf8] sm:$0xff] (!%p2198_p11)  }
 0x153   : > { %1414 = vmatpush1.bf16.msra.mxu0 %v2528_v60  ;;  %1496 = vmatpush1.bf16.msra.mxu1 %v2531_v61  ;;  %v2570_v60 = vld [vmem:[%s3092_s5 + $0x38] sm:$0xff] (!%p2198_p11)  }
 0x154   : > { %1415 = vmatprep.subr.bf16.mxu0 %v2536_v63  ;;  %1497 = vmatprep.subr.bf16.mxu1 %v2539_v0  ;;  %v2571_v61 = vld [vmem:[%s3092_s5 + $0xb8] sm:$0xff] (!%p2198_p11)   ;;  %v1542_v63 = vrot.slane (!%p2198_p11), %v1537_v62, %v387_v39  ;;  %v1546_v0 = vrot.slane (!%p2198_p11), %v1537_v62, %v391_v41 }
 0x156   : > { %v1555_v3 = vcombine.low (!%p2198_p11), %v1542_v63, %v1546_v0 }
 0x157   : > { %1416 = vmatpush1.bf16.msra.mxu0 %v2534_v1  ;;  %1498 = vmatpush1.bf16.msra.mxu1 %v2537_v2  ;;  %v1550_v1 = vrot.slane (!%p2198_p11), %v1537_v62, %v395_v56  ;;  %v1554_v2 = vrot.slane (!%p2198_p11), %v1537_v62, %v399_v45 }
 0x158   : > { %2238 = vmatprep.subr.bf16.mxu0 (!%p2198_p11), %v2540_v22  ;;  %2260 = vmatprep.subr.bf16.mxu1 (!%p2198_p11), %v2541_v23  ;;  %v1563_v5 = vrot.slane (!%p2198_p11), %v1555_v3, %v2928_v9 }
 0x15a   : > { %1418 = vmatmul.mubr.bf16.vlgmr.msra.gmra.mrb[4].mxu0 %v574_v4  ;;  %1500 = vmatmul.mubr.bf16.vlgmr.msra.gmra.mrb[4].mxu1 %v574_v4  ;;  %v1556_v4 = vcombine.low (!%p2198_p11), %v1550_v1, %v1554_v2 }
 0x15b   : > { %2239 = vmatpush3.bf16.msra.mxu0 (!%p2198_p11), %v2542_v24  ;;  %2261 = vmatpush3.bf16.msra.mxu1 (!%p2198_p11), %v2543_v25 }
 0x15c   : > { %2240 = vmatprep.subr.bf16.mxu0 (!%p2198_p11), %v2544_v26  ;;  %2262 = vmatprep.subr.bf16.mxu1 (!%p2198_p11), %v2545_v27  ;;  %v1570_v6 = vrot.slane (!%p2198_p11), %v1556_v4, %v2928_v9 }
 0x15f   : > { %2241 = vmatpush3.bf16.msra.mxu0 (!%p2198_p11), %v2546_v28  ;;  %2263 = vmatpush3.bf16.msra.mxu1 (!%p2198_p11), %v2547_v29 }
 0x160   : > { %2242 = vmatprep.subr.bf16.mxu0 (!%p2198_p11), %v2548_v30  ;;  %2264 = vmatprep.subr.bf16.mxu1 (!%p2198_p11), %v2549_v31 }
 0x163   : > { %2243 = vmatpush3.bf16.msra.mxu0 (!%p2198_p11), %v2550_v32  ;;  %2265 = vmatpush3.bf16.msra.mxu1 (!%p2198_p11), %v2551_v33 }
 0x164   : > { %2244 = vmatprep.subr.bf16.mxu0 (!%p2198_p11), %v2552_v34  ;;  %2266 = vmatprep.subr.bf16.mxu1 (!%p2198_p11), %v2553_v35 }
 0x167   : > { %2245 = vmatpush3.bf16.msra.mxu0 (!%p2198_p11), %v2554_v36  ;;  %2267 = vmatpush3.bf16.msra.mxu1 (!%p2198_p11), %v2555_v42 }
 0x168   : > { %2246 = vmatprep.subr.bf16.mxu0 (!%p2198_p11), %v2556_v43  ;;  %2268 = vmatprep.subr.bf16.mxu1 (!%p2198_p11), %v2557_v44 }
 0x16b   : > { %2247 = vmatpush3.bf16.msra.mxu0 (!%p2198_p11), %v2558_v46  ;;  %2269 = vmatpush3.bf16.msra.mxu1 (!%p2198_p11), %v2559_v47 }
 0x16c   : > { %2248 = vmatprep.subr.bf16.mxu0 (!%p2198_p11), %v2560_v48  ;;  %2270 = vmatprep.subr.bf16.mxu1 (!%p2198_p11), %v2561_v49 }
 0x16f   : > { %2249 = vmatpush3.bf16.msra.mxu0 (!%p2198_p11), %v2562_v50  ;;  %2271 = vmatpush3.bf16.msra.mxu1 (!%p2198_p11), %v2563_v51 }
 0x170   : > { %2250 = vmatprep.subr.bf16.mxu0 (!%p2198_p11), %v2564_v52  ;;  %2272 = vmatprep.subr.bf16.mxu1 (!%p2198_p11), %v2565_v53 }
 0x173   : > { %2251 = vmatpush3.bf16.msra.mxu0 (!%p2198_p11), %v2566_v54  ;;  %2273 = vmatpush3.bf16.msra.mxu1 (!%p2198_p11), %v2567_v55 }
 0x174   : > { %2252 = vmatprep.subr.bf16.mxu0 (!%p2198_p11), %v2568_v57  ;;  %2274 = vmatprep.subr.bf16.mxu1 (!%p2198_p11), %v2569_v59 }
 0x177   : > { %2253 = vmatpush3.bf16.msra.mxu0 (!%p2198_p11), %v2570_v60  ;;  %2275 = vmatpush3.bf16.msra.mxu1 (!%p2198_p11), %v2571_v61 }
 0x22d   : > { %v1419_v7 = vpop.f32.mrb[4].mxu0  ;;  %v1501_v8 = vpop.f32.mrb[4].mxu1 }
 0x22e   : > { %v1421_v10 = vpop.f32.mrb[5].mxu0  ;;  %v1503_v11 = vpop.f32.mrb[5].mxu1 }
 0x22f   : > { %v1512_v12 = vcombine.low %v1419_v7, %v1421_v10  ;;  %v1513_v13 = vcombine.low %v1501_v8, %v1503_v11  ;;  %v1423_v58 = vpop.f32.mrb[6].mxu0  ;;  %v1505_v14 = vpop.f32.mrb[6].mxu1  ;;  %v1571_v7 = vcombine.low (!%p2198_p11), %v1563_v5, %v1570_v6 }
 0x230   : > { %v1424_v15 = vpop.f32.mrb[7].mxu0  ;;  %v1506_v16 = vpop.f32.mrb[7].mxu1  ;;  %v2199_v14 = vld [vmem:[%s3093_s6] ss:$0 sm:$0xff] (!%p2198_p11) }
 0x231   : > { %v1520_v17 = vrot.slane %v1512_v12, %v2928_v9  ;;  %v1527_v18 = vrot.slane %v1513_v13, %v2928_v9  ;;  %1535 = sbr.rel (%p2198_p11) target bundleno = 1121 (0x461), region = 79  ;;  %v1944_v16 = vand.u32 (!%p2198_p11), 127, %v385_v37 }
 0x233   : > { %v1528_v20 = vcombine.low %v1520_v17, %v1527_v18  ;;  %vm1945_vm1 = vcmp.lt.s32.totalorder (!%p2198_p11), %v1944_v16, 3  ;;  %vm1946_vm3 = vcmp.ge.s32.totalorder (!%p2198_p11), %v1944_v16, 6 }
 0x235   : > { %v1530_v21 = vadd.f32 %v1528_v20, %v571_v19 }
 0x237   : > { %1531 = vst [vmem:[#allocation2] sm:$0xff] %v1530_v21 }
 0x23e   : > { %v1536_v40 = vld [vmem:[#allocation2] sm:$0xff] }
 0x23f   : > { %v1573_v8 = vadd.f32 %v1571_v7, %v1536_v40 }
 0x241   : > { %v1582_v39 = vrot.slane %v1573_v8, %v2928_v9  ;;  %v1575_v10 = vcombine.high %v1573_v8, %v1573_v8 }
 0x243   : > { %v1590_v11 = vcombine.high %v1582_v39, %v1582_v39  ;;  %v1589_v41 = vrot.slane %v1575_v10, %v2928_v9  ;;  %v1596_v12 = vpack.c.bf16 %v1582_v39, %v1582_v39 }
 0x245   : > { %v1597_v56 = vpack.c.bf16 %v1590_v11, %v1590_v11  ;;  %v1591_v13 = vcombine.high %v1589_v41, %v1589_v41  ;;  %v1598_v38 = vpack.c.bf16 %v1589_v41, %v1589_v41 }
 0x247   : > { %1895 = vmatprep.mubr.bf16.mxu0 %v1597_v56  ;;  %v1599_v45 = vpack.c.bf16 %v1591_v13, %v1591_v13 }
 0x248   : > { %1896 = vmatmul.mubr.bf16.vlgmr.msra.gmra.mrb[0].mxu0 %v1596_v12 }
 0x249   : > { %1935 = vmatprep.mubr.bf16.mxu1 %v1599_v45 }
 0x24a   : > { %1936 = vmatmul.mubr.bf16.vlgmr.msra.gmra.mrb[0].mxu1 %v1598_v38 }
 0x31b   : > { %v2254_v58 = vpop.f32.mrb[0].mxu0 }
 0x31c   : > { %v2255_v15 = vpop.f32.mrb[1].mxu0 }
 0x31d   : > { %v2276_v17 = vpop.f32.mrb[0].mxu1  ;;  %v2256_v18 = vadd.f32 %v2255_v15, %v2254_v58  ;;  %v2257_v9 = vpop.f32.mrb[2].mxu0 }
 0x31e   : > { %v2277_v19 = vpop.f32.mrb[1].mxu1  ;;  %v2258_v20 = vpop.f32.mrb[3].mxu0 }
 0x31f   : > { %v1898_v21 = vadd.f32 %v2256_v18, %v2199_v14  ;;  %v2278_v22 = vadd.f32 %v2277_v19, %v2276_v17  ;;  %v2279_v23 = vpop.f32.mrb[2].mxu1 }
 0x320   : > { %v2280_v24 = vpop.f32.mrb[3].mxu1 }
 0x321   : > { %v1938_v25 = vadd.f32 %v2278_v22, %v1898_v21 }
 0x323   : > { %v1947_v26 = vsel %vm1945_vm1, %v1938_v25, -inf  ;;  %v1961_v33 = vmul.f32 1.442695, %v1938_v25 }
 0x324   : > { %v1949_v27 = vsel %vm1948_vm2, %v1947_v26, -inf }
 0x325   : > { %1950 = vmax.xlane.f32.xlu0 %v1949_v27 }
 0x3b2   : > { %v1951_v28 = vpop.xlane.xlu0 %1950 }
 0x3b3   : > { %v1952_v29 = vsub.f32 %v1938_v25, %v1951_v28 }
 0x3b5   : > { %v1953_v37 = vmul.f32 1.442695, %v1952_v29 }
 0x3b7   : > { %2572 = vpow2.f32 %v1953_v37 }
 0x3b8   : > { %2574 = vpow2.f32 %v1961_v33 }
 0x3c1   : > { %v2573_v30 = vpop.eup %2572 }
 0x3c2   : > { %v1955_v31 = vsel %vm1945_vm1, %v2573_v30, 0.0  ;;  %v2575_v35 = vpop.eup %2574 }
 0x3c3   : > { %v1956_v32 = vsel %vm1948_vm2, %v1955_v31, 0.0  ;;  %v1963_v43 = vsel %vm1946_vm3, %v2575_v35, %v1938_v25 }
 0x3c4   : > { %1957 = vadd.xlane.f32.xlu0 %v1956_v32 }
 0x451   : > { %v1958_v34 = vpop.xlane.xlu0 %1957 }
 0x452   : > { %2576 = vrcp.f32 %v1958_v34 }
 0x45c   : > { %v2577_v36 = vpop.eup %2576 }
 0x45d   : > { %v1960_v42 = vmul.f32 %v2577_v36, %v1955_v31 }
 0x45f   : > { %v1964_v44 = vsel %vm1945_vm1, %v1960_v42, %v1963_v43 }
 0x460   : > { %1965 = vst.msk [vmem:[#allocation4] sm:$0x3] %vm1948_vm2, %v1964_v44 }
 0x461 PF: > { %p2294_p12 = scmp.eq.s32.totalorder %s2692_s27, 3  ;;  %s2635_s26 = smov [#allocation4]  }
 0x462   : > { %s1973_s29 = sshll.u32 %s2635_s26, 4  ;;  %s1974_s29 = int_to_ptr.vmem [resolvable:$true] %s1973_s29 }
 0x463   : > { %s2578_s30 = scalar_lea.vmem %s1974_s29, 32  ;;  %p2585_p2 = scmp.lt.s32.totalorder %s1974_s29, %s1974_s29 }
 0x464   : > { %p2579_p13 = scmp.ne.s32.totalorder %s1974_s29, %s2578_s30  ;;  %p2586_p3 = scmp.lt.s32.totalorder %s2578_s30, %s2578_s30 }
 0x466   : > { %p2580_p0 = pnand %p2579_p13, %p2294_p12  ;;  %p2587_p4 = por %p2586_p3, %p2585_p2 }
 0x468   : > { %p2581_p1 = pneg %p2580_p0 }
 0x46a   : > { %p2588_p5 = pnand %p2587_p4, %p2581_p1 }
 0x46c   : > { %2591 = shalt.err (!%p2588_p5)
}
 0x46d   : > { %s2592_s10 = scalar_lea.hbm %s3094_s7, 32 }
 0x46e   : > { %p2593_p6 = scmp.ne.s32.totalorder %s3094_s7, %s2592_s10  ;;  %p2598_p9 = scmp.lt.u32.totalorder %s2592_s10, %s3094_s7 }
 0x470   : > { %p2594_p7 = pnand %p2593_p6, %p2294_p12 }
 0x472   : > { %p2595_p8 = pneg %p2594_p7 }
 0x474   : > { %p2600_p10 = pnand %p2598_p9, %p2595_p8 }
 0x476   : > { %2603 = shalt.err (!%p2600_p10)
}
 0x477   : > { %2291 = dma.vmem_to_hbm [thread:$0]  (%p2294_p12), %s1974_s29, 32, %s3094_s7, [#allocation5]  }
 0x478   : > { %2617 = dma.done.wait (%p2294_p12), [#allocation5], 32  }
 0x479   : > { %2619 = vsyncadd (%p2294_p12), [#allocation5], 4294967264 }
 0x47a PF: > { %p15_p11 = scmp.ge.s32.totalorder %s2695_s28, 6   ;;  %s3095_s24 = smov %s2626_s25 }
 0x47b   : > { %s3096_s25 = smov %s2704_s8  ;;  %s3097_s26 = smov %s2695_s28 }
 0x47c   :  { %17 = sbr.rel (!%p15_p11) target bundleno = 2 (0x2), region = 117 }
 0x483   :  { %1986 = vsyncpa [#allocation5], 1 }
 0x484   :  { %1988 = vsyncpa [#allocation5 + $0x1], 1 }

</bundles_post_ra>
